<compile_context>
chip_gen: v6e
topology: v6e:2x2x1
jax: 0.10.0
libtpu: 0.0.40
codegen_flags: <defaults>
</compile_context>

<pallas_src>
import jax
import jax.numpy as jnp
import numpy as np
from jax.experimental import pallas as pl
from jax.experimental.pallas import tpu as pltpu


def _round_up(x, m):
    return (x + m - 1) // m * m


def _pick_bn(n, max_bn=8):
    """Images per grid step: largest divisor of n (<= max_bn), preferring an
    even number of grid steps so v7x's two TensorCores both get work."""
    divisors = [b for b in range(1, min(max_bn, n) + 1) if n % b == 0]
    even = [b for b in divisors if (n // b) % 2 == 0]
    return max(even) if even else max(divisors)


def _make_tap_masks(H, W, bn):
    """(9, 1, Bn*HW) f32 border-validity masks + non-negative lane shifts.

    Masks are computed from (pos % HW) so they stay per-image correct when Bn
    images share the lane axis; they also kill all circular-roll wrap-around.
    Tap order: oy major, ox minor (matches HWIO kernel flattening)."""
    hw = H * W
    L = bn * hw
    p = np.arange(L) % hw
    hh = p // W
    ww = p % W
    masks, shifts = [], []
    for oy in (-1, 0, 1):
        for ox in (-1, 0, 1):
            valid = ((hh + oy >= 0) & (hh + oy < H) &
                     (ww + ox >= 0) & (ww + ox < W))
            masks.append(valid.astype(np.float32))
            shifts.append((-(oy * W + ox)) % L)
    center = 4  # tap (oy, ox) == (0, 0)
    return jnp.asarray(np.stack(masks)).reshape(9, 1, L), tuple(shifts), center


def _prep_weight_taps(w_hwio, cin_pad):
    """(3,3,Cin,Cout) HWIO -> (9, Cout, cin_pad) bf16 per-tap matrices."""
    kh, kw, cin, cout = w_hwio.shape
    w = jnp.pad(w_hwio, ((0, 0), (0, 0), (0, cin_pad - cin), (0, 0)))
    w = w.reshape(kh * kw, cin_pad, cout)
    return jnp.transpose(w, (0, 2, 1)).astype(jnp.bfloat16)


def _conv3x3_relu(x, w_ref, bias, m_ref, shifts, center):
    """3x3 'SAME' conv + bias + ReLU on a (C, L) slab via 9 per-tap matmuls.

    x:     (C, L)  f32, channels on sublanes, Bn flattened images on lanes
    w_ref: (9, Cout, C) bf16 per-tap weights
    bias:  (Cout, 1) f32
    m_ref: (9, 1, L) f32 border masks (constant across grid steps)
    """
    cout = w_ref.shape[1]
    L = x.shape[1]
    acc = jnp.zeros((cout, L), jnp.float32)
    for t, shift in enumerate(shifts):
        if t == center:
            piece = x                                        # no roll, no mask
        else:
            # XLU lane rotate (f32) + f32 mask multiply (v5e-friendly),
            # cast to bf16 only right before the MXU matmul.
            piece = pltpu.roll(x, shift, axis=1) * m_ref[t]
        acc = acc + jnp.dot(w_ref[t], piece.astype(jnp.bfloat16),
                            preferred_element_type=jnp.float32)
    return jnp.maximum(acc + bias, 0.0)


def _make_kernel(shifts, center):
    def kernel(x_ref, m_ref, w1_ref, b1_ref, w2_ref, b2_ref, o_ref):
        x = x_ref[0].astype(jnp.float32)                     # (cp1, L)
        h1 = _conv3x3_relu(x, w1_ref, b1_ref[...], m_ref, shifts, center)
        # Dropout(0.6): identity (eval mode).
        h2 = _conv3x3_relu(h1, w2_ref, b2_ref[...], m_ref, shifts, center)
        # Dropout(0.6): identity (eval mode).
        o_ref[0] = h2.astype(o_ref.dtype)
    return kernel


def down_block(x_nchw, w1, b1, w2, b2, *, max_images_per_step=8):
    """DownBlock.forward: NCHW in -> NCHW out. Weights HWIO, biases (C,)."""
    N, Cin, H, W = x_nchw.shape
    HW = H * W
    C1 = w1.shape[-1]
    C2 = w2.shape[-1]
    cp1 = _round_up(Cin, 8)

    Bn = _pick_bn(N, max_images_per_step)   # images per grid step
    G = N // Bn
    L = Bn * HW

    # Wrapper-side layout plumbing (cheap one-time XLA ops in HBM):
    #  - zero-pad input channels to a sublane-aligned count,
    #  - lay Bn images side by side on the lane axis: (G, cp1, Bn*HW).
    x_p = x_nchw
    if cp1 > Cin:
        x_p = jnp.pad(x_nchw, ((0, 0), (0, cp1 - Cin), (0, 0), (0, 0)))
    x_g = (x_p.reshape(G, Bn, cp1, HW)
              .transpose(0, 2, 1, 3)
              .reshape(G, cp1, L))

    masks, shifts, center = _make_tap_masks(H, W, Bn)
    w1t = _prep_weight_taps(w1, cp1)                        # (9, C1, cp1) bf16
    w2t = _prep_weight_taps(w2, C1)                         # (9, C2, C1)  bf16
    b1c = b1.reshape(C1, 1).astype(jnp.float32)
    b2c = b2.reshape(C2, 1).astype(jnp.float32)

    # Explicit VMEM budget (double-buffered x/out blocks + constants + live
    # f32 working slabs), capped at 32 MiB (safe on v5e/v6e/v7x).
    block_bytes = 4 * L * (cp1 + C2)
    const_bytes = masks.size * 4 + w1t.size * 2 + w2t.size * 2 + (C1 + C2) * 4
    work_bytes = 4 * L * (cp1 + 2 * C1 + 2 * C2)
    vmem_limit = int(min(max(2 * (2 * block_bytes + const_bytes + work_bytes),
                             4 << 20), 32 << 20))

    flops = 2 * N * HW * 9 * (cp1 * C1 + C1 * C2)
    bytes_accessed = (x_g.size * x_g.dtype.itemsize + masks.size * 4 +
                      w1t.size * 2 + w2t.size * 2 + (C1 + C2) * 4 +
                      N * C2 * HW * 4)

    out_g = pl.pallas_call(
        _make_kernel(shifts, center),
        out_shape=jax.ShapeDtypeStruct((G, C2, L), x_nchw.dtype),
        grid=(G,),
        in_specs=[
            pl.BlockSpec((1, cp1, L), lambda g: (g, 0, 0)),   # image slab
            pl.BlockSpec((9, 1, L), lambda g: (0, 0, 0)),     # masks (const)
            pl.BlockSpec((9, C1, cp1), lambda g: (0, 0, 0)),  # conv1 taps
            pl.BlockSpec((C1, 1), lambda g: (0, 0)),          # conv1 bias
            pl.BlockSpec((9, C2, C1), lambda g: (0, 0, 0)),   # conv2 taps
            pl.BlockSpec((C2, 1), lambda g: (0, 0)),          # conv2 bias
        ],
        out_specs=pl.BlockSpec((1, C2, L), lambda g: (g, 0, 0)),
        compiler_params=pltpu.CompilerParams(
            dimension_semantics=("parallel",),
            vmem_limit_bytes=vmem_limit),
        cost_estimate=pl.CostEstimate(
            flops=flops, transcendentals=0, bytes_accessed=bytes_accessed),
    )(x_g, masks, w1t, b1c, w2t, b2c)

    # Undo the lane-axis batching: (G, C2, Bn*HW) -> NCHW.
    return (out_g.reshape(G, C2, Bn, HW)
                 .transpose(0, 2, 1, 3)
                 .reshape(N, C2, H, W))


def _init_conv_params(kw, kb, cin, cout):
    # Deterministic, PyTorch-Conv2d-style uniform init: U(-1/sqrt(fan_in), +).
    fan_in = cin * 3 * 3
    bound = 1.0 / np.sqrt(fan_in)
    w = jax.random.uniform(kw, (3, 3, cin, cout), jnp.float32, -bound, bound)
    b = jax.random.uniform(kb, (cout,), jnp.float32, -bound, bound)
    return w, b


if __name__ == "__main__":
    in_size, out_size = 4, 8
    N, H, W = 2, 16, 16

    key = jax.random.PRNGKey(0)
    k_x, k_w1, k_b1, k_w2, k_b2 = jax.random.split(key, 5)

    x_nchw = jax.random.normal(k_x, (N, in_size, H, W), jnp.float32)
    w1, b1 = _init_conv_params(k_w1, k_b1, in_size, out_size)
    w2, b2 = _init_conv_params(k_w2, k_b2, out_size, out_size)

    out = jax.block_until_ready(down_block(x_nchw, w1, b1, w2, b2))
    assert out.shape == (N, out_size, H, W)

    # Pure-JAX f32 reference (same math; eval-mode dropout == identity).
    # Tolerance loosened for bf16 MXU operands (accumulation stays f32).
    def ref_conv(xc, w, b):
        y = jax.lax.conv_general_dilated(
            xc, w, (1, 1), "SAME",
            dimension_numbers=("NCHW", "HWIO", "NCHW"))
        return jnp.maximum(y + b.reshape(1, -1, 1, 1), 0.0)

    ref = ref_conv(ref_conv(x_nchw, w1, b1), w2, b2)
    np.testing.assert_allclose(np.asarray(out), np.asarray(ref),
                               rtol=2e-2, atol=2e-2)

    print("KERNEL_OK")
</pallas_src>

<mosaic_0001>
module attributes {stable_mosaic.version = 11 : i64} {
  func.func @kernel(%arg0: i32, %arg1: memref<1x8x256xf32, #tpu.memory_space<vmem>>, %arg2: memref<9x1x256xf32, #tpu.memory_space<vmem>>, %arg3: memref<9x8x8xbf16, #tpu.memory_space<vmem>>, %arg4: memref<8x1xf32, #tpu.memory_space<vmem>>, %arg5: memref<9x8x8xbf16, #tpu.memory_space<vmem>>, %arg6: memref<8x1xf32, #tpu.memory_space<vmem>>, %arg7: memref<1x8x256xf32, #tpu.memory_space<vmem>>) attributes {dimension_semantics = [#tpu.dimension_semantics<parallel>], iteration_bounds = array<i64: 2>, scalar_prefetch = 0 : i64, scratch_operands = 0 : i64, tpu.core_type = #tpu.core_type<tc>, window_params = [{transform_indices = @transform_0, window_bounds = array<i64: 1, 8, 256>}, {pipeline_mode = #tpu.pipeline_mode<synchronous>, transform_indices = @transform_1, window_bounds = array<i64: 9, 1, 256>}, {pipeline_mode = #tpu.pipeline_mode<synchronous>, transform_indices = @transform_2, window_bounds = array<i64: 9, 8, 8>}, {pipeline_mode = #tpu.pipeline_mode<synchronous>, transform_indices = @transform_3, window_bounds = array<i64: 8, 1>}, {pipeline_mode = #tpu.pipeline_mode<synchronous>, transform_indices = @transform_4, window_bounds = array<i64: 9, 8, 8>}, {pipeline_mode = #tpu.pipeline_mode<synchronous>, transform_indices = @transform_5, window_bounds = array<i64: 8, 1>}, {transform_indices = @transform_6, window_bounds = array<i64: 1, 8, 256>}]} {
    %c0 = arith.constant 0 : index
    %c0_0 = arith.constant 0 : index
    %c0_1 = arith.constant 0 : index
    %0 = vector.load %arg1[%c0, %c0_0, %c0_1] : memref<1x8x256xf32, #tpu.memory_space<vmem>>, vector<1x8x256xf32>
    %1 = vector.shape_cast %0 : vector<1x8x256xf32> to vector<8x256xf32>
    %c0_2 = arith.constant 0 : index
    %c0_3 = arith.constant 0 : index
    %2 = vector.load %arg4[%c0_2, %c0_3] : memref<8x1xf32, #tpu.memory_space<vmem>>, vector<8x1xf32>
    %cst = arith.constant 0.000000e+00 : f32
    %3 = vector.broadcast %cst : f32 to vector<8x256xf32>
    %c17_i32 = arith.constant 17 : i32
    %4 = tpu.dynamic_rotate %1 by %c17_i32 dim 1 : vector<8x256xf32>, i32 -> vector<8x256xf32>
    %c0_4 = arith.constant 0 : index
    %c0_5 = arith.constant 0 : index
    %c0_6 = arith.constant 0 : index
    %5 = vector.load %arg2[%c0_4, %c0_5, %c0_6] : memref<9x1x256xf32, #tpu.memory_space<vmem>>, vector<1x1x256xf32>
    %6 = vector.shape_cast %5 : vector<1x1x256xf32> to vector<1x256xf32>
    %7 = vector.broadcast %6 : vector<1x256xf32> to vector<8x256xf32>
    %8 = arith.mulf %4, %7 : vector<8x256xf32>
    %c0_7 = arith.constant 0 : index
    %c0_8 = arith.constant 0 : index
    %c0_9 = arith.constant 0 : index
    %9 = vector.load %arg3[%c0_7, %c0_8, %c0_9] : memref<9x8x8xbf16, #tpu.memory_space<vmem>>, vector<1x8x8xbf16>
    %10 = vector.shape_cast %9 : vector<1x8x8xbf16> to vector<8x8xbf16>
    %11 = arith.truncf %8 : vector<8x256xf32> to vector<8x256xbf16>
    %cst_10 = arith.constant dense<0.000000e+00> : vector<8x256xf32>
    %12 = tpu.matmul %10, %11, %cst_10 {dimension_numbers = #tpu.dot_dimension_numbers<[1], [0], [0], [1], [0, 0, 1, 1], [], []>} : vector<8x8xbf16>, vector<8x256xbf16>, vector<8x256xf32> -> vector<8x256xf32>
    %13 = arith.addf %3, %12 : vector<8x256xf32>
    %c16_i32 = arith.constant 16 : i32
    %14 = tpu.dynamic_rotate %1 by %c16_i32 dim 1 : vector<8x256xf32>, i32 -> vector<8x256xf32>
    %c1 = arith.constant 1 : index
    %c0_11 = arith.constant 0 : index
    %c0_12 = arith.constant 0 : index
    %15 = vector.load %arg2[%c1, %c0_11, %c0_12] : memref<9x1x256xf32, #tpu.memory_space<vmem>>, vector<1x1x256xf32>
    %16 = vector.shape_cast %15 : vector<1x1x256xf32> to vector<1x256xf32>
    %17 = vector.broadcast %16 : vector<1x256xf32> to vector<8x256xf32>
    %18 = arith.mulf %14, %17 : vector<8x256xf32>
    %c1_13 = arith.constant 1 : index
    %c0_14 = arith.constant 0 : index
    %c0_15 = arith.constant 0 : index
    %19 = vector.load %arg3[%c1_13, %c0_14, %c0_15] : memref<9x8x8xbf16, #tpu.memory_space<vmem>>, vector<1x8x8xbf16>
    %20 = vector.shape_cast %19 : vector<1x8x8xbf16> to vector<8x8xbf16>
    %21 = arith.truncf %18 : vector<8x256xf32> to vector<8x256xbf16>
    %cst_16 = arith.constant dense<0.000000e+00> : vector<8x256xf32>
    %22 = tpu.matmul %20, %21, %cst_16 {dimension_numbers = #tpu.dot_dimension_numbers<[1], [0], [0], [1], [0, 0, 1, 1], [], []>} : vector<8x8xbf16>, vector<8x256xbf16>, vector<8x256xf32> -> vector<8x256xf32>
    %23 = arith.addf %13, %22 : vector<8x256xf32>
    %c15_i32 = arith.constant 15 : i32
    %24 = tpu.dynamic_rotate %1 by %c15_i32 dim 1 : vector<8x256xf32>, i32 -> vector<8x256xf32>
    %c2 = arith.constant 2 : index
    %c0_17 = arith.constant 0 : index
    %c0_18 = arith.constant 0 : index
    %25 = vector.load %arg2[%c2, %c0_17, %c0_18] : memref<9x1x256xf32, #tpu.memory_space<vmem>>, vector<1x1x256xf32>
    %26 = vector.shape_cast %25 : vector<1x1x256xf32> to vector<1x256xf32>
    %27 = vector.broadcast %26 : vector<1x256xf32> to vector<8x256xf32>
    %28 = arith.mulf %24, %27 : vector<8x256xf32>
    %c2_19 = arith.constant 2 : index
    %c0_20 = arith.constant 0 : index
    %c0_21 = arith.constant 0 : index
    %29 = vector.load %arg3[%c2_19, %c0_20, %c0_21] : memref<9x8x8xbf16, #tpu.memory_space<vmem>>, vector<1x8x8xbf16>
    %30 = vector.shape_cast %29 : vector<1x8x8xbf16> to vector<8x8xbf16>
    %31 = arith.truncf %28 : vector<8x256xf32> to vector<8x256xbf16>
    %cst_22 = arith.constant dense<0.000000e+00> : vector<8x256xf32>
    %32 = tpu.matmul %30, %31, %cst_22 {dimension_numbers = #tpu.dot_dimension_numbers<[1], [0], [0], [1], [0, 0, 1, 1], [], []>} : vector<8x8xbf16>, vector<8x256xbf16>, vector<8x256xf32> -> vector<8x256xf32>
    %33 = arith.addf %23, %32 : vector<8x256xf32>
    %c1_i32 = arith.constant 1 : i32
    %34 = tpu.dynamic_rotate %1 by %c1_i32 dim 1 : vector<8x256xf32>, i32 -> vector<8x256xf32>
    %c3 = arith.constant 3 : index
    %c0_23 = arith.constant 0 : index
    %c0_24 = arith.constant 0 : index
    %35 = vector.load %arg2[%c3, %c0_23, %c0_24] : memref<9x1x256xf32, #tpu.memory_space<vmem>>, vector<1x1x256xf32>
    %36 = vector.shape_cast %35 : vector<1x1x256xf32> to vector<1x256xf32>
    %37 = vector.broadcast %36 : vector<1x256xf32> to vector<8x256xf32>
    %38 = arith.mulf %34, %37 : vector<8x256xf32>
    %c3_25 = arith.constant 3 : index
    %c0_26 = arith.constant 0 : index
    %c0_27 = arith.constant 0 : index
    %39 = vector.load %arg3[%c3_25, %c0_26, %c0_27] : memref<9x8x8xbf16, #tpu.memory_space<vmem>>, vector<1x8x8xbf16>
    %40 = vector.shape_cast %39 : vector<1x8x8xbf16> to vector<8x8xbf16>
    %41 = arith.truncf %38 : vector<8x256xf32> to vector<8x256xbf16>
    %cst_28 = arith.constant dense<0.000000e+00> : vector<8x256xf32>
    %42 = tpu.matmul %40, %41, %cst_28 {dimension_numbers = #tpu.dot_dimension_numbers<[1], [0], [0], [1], [0, 0, 1, 1], [], []>} : vector<8x8xbf16>, vector<8x256xbf16>, vector<8x256xf32> -> vector<8x256xf32>
    %43 = arith.addf %33, %42 : vector<8x256xf32>
    %c4 = arith.constant 4 : index
    %c0_29 = arith.constant 0 : index
    %c0_30 = arith.constant 0 : index
    %44 = vector.load %arg3[%c4, %c0_29, %c0_30] : memref<9x8x8xbf16, #tpu.memory_space<vmem>>, vector<1x8x8xbf16>
    %45 = vector.shape_cast %44 : vector<1x8x8xbf16> to vector<8x8xbf16>
    %46 = arith.truncf %1 : vector<8x256xf32> to vector<8x256xbf16>
    %cst_31 = arith.constant dense<0.000000e+00> : vector<8x256xf32>
    %47 = tpu.matmul %45, %46, %cst_31 {dimension_numbers = #tpu.dot_dimension_numbers<[1], [0], [0], [1], [0, 0, 1, 1], [], []>} : vector<8x8xbf16>, vector<8x256xbf16>, vector<8x256xf32> -> vector<8x256xf32>
    %48 = arith.addf %43, %47 : vector<8x256xf32>
    %c255_i32 = arith.constant 255 : i32
    %49 = tpu.dynamic_rotate %1 by %c255_i32 dim 1 : vector<8x256xf32>, i32 -> vector<8x256xf32>
    %c5 = arith.constant 5 : index
    %c0_32 = arith.constant 0 : index
    %c0_33 = arith.constant 0 : index
    %50 = vector.load %arg2[%c5, %c0_32, %c0_33] : memref<9x1x256xf32, #tpu.memory_space<vmem>>, vector<1x1x256xf32>
    %51 = vector.shape_cast %50 : vector<1x1x256xf32> to vector<1x256xf32>
    %52 = vector.broadcast %51 : vector<1x256xf32> to vector<8x256xf32>
    %53 = arith.mulf %49, %52 : vector<8x256xf32>
    %c5_34 = arith.constant 5 : index
    %c0_35 = arith.constant 0 : index
    %c0_36 = arith.constant 0 : index
    %54 = vector.load %arg3[%c5_34, %c0_35, %c0_36] : memref<9x8x8xbf16, #tpu.memory_space<vmem>>, vector<1x8x8xbf16>
    %55 = vector.shape_cast %54 : vector<1x8x8xbf16> to vector<8x8xbf16>
    %56 = arith.truncf %53 : vector<8x256xf32> to vector<8x256xbf16>
    %cst_37 = arith.constant dense<0.000000e+00> : vector<8x256xf32>
    %57 = tpu.matmul %55, %56, %cst_37 {dimension_numbers = #tpu.dot_dimension_numbers<[1], [0], [0], [1], [0, 0, 1, 1], [], []>} : vector<8x8xbf16>, vector<8x256xbf16>, vector<8x256xf32> -> vector<8x256xf32>
    %58 = arith.addf %48, %57 : vector<8x256xf32>
    %c241_i32 = arith.constant 241 : i32
    %59 = tpu.dynamic_rotate %1 by %c241_i32 dim 1 : vector<8x256xf32>, i32 -> vector<8x256xf32>
    %c6 = arith.constant 6 : index
    %c0_38 = arith.constant 0 : index
    %c0_39 = arith.constant 0 : index
    %60 = vector.load %arg2[%c6, %c0_38, %c0_39] : memref<9x1x256xf32, #tpu.memory_space<vmem>>, vector<1x1x256xf32>
    %61 = vector.shape_cast %60 : vector<1x1x256xf32> to vector<1x256xf32>
    %62 = vector.broadcast %61 : vector<1x256xf32> to vector<8x256xf32>
    %63 = arith.mulf %59, %62 : vector<8x256xf32>
    %c6_40 = arith.constant 6 : index
    %c0_41 = arith.constant 0 : index
    %c0_42 = arith.constant 0 : index
    %64 = vector.load %arg3[%c6_40, %c0_41, %c0_42] : memref<9x8x8xbf16, #tpu.memory_space<vmem>>, vector<1x8x8xbf16>
    %65 = vector.shape_cast %64 : vector<1x8x8xbf16> to vector<8x8xbf16>
    %66 = arith.truncf %63 : vector<8x256xf32> to vector<8x256xbf16>
    %cst_43 = arith.constant dense<0.000000e+00> : vector<8x256xf32>
    %67 = tpu.matmul %65, %66, %cst_43 {dimension_numbers = #tpu.dot_dimension_numbers<[1], [0], [0], [1], [0, 0, 1, 1], [], []>} : vector<8x8xbf16>, vector<8x256xbf16>, vector<8x256xf32> -> vector<8x256xf32>
    %68 = arith.addf %58, %67 : vector<8x256xf32>
    %c240_i32 = arith.constant 240 : i32
    %69 = tpu.dynamic_rotate %1 by %c240_i32 dim 1 : vector<8x256xf32>, i32 -> vector<8x256xf32>
    %c7 = arith.constant 7 : index
    %c0_44 = arith.constant 0 : index
    %c0_45 = arith.constant 0 : index
    %70 = vector.load %arg2[%c7, %c0_44, %c0_45] : memref<9x1x256xf32, #tpu.memory_space<vmem>>, vector<1x1x256xf32>
    %71 = vector.shape_cast %70 : vector<1x1x256xf32> to vector<1x256xf32>
    %72 = vector.broadcast %71 : vector<1x256xf32> to vector<8x256xf32>
    %73 = arith.mulf %69, %72 : vector<8x256xf32>
    %c7_46 = arith.constant 7 : index
    %c0_47 = arith.constant 0 : index
    %c0_48 = arith.constant 0 : index
    %74 = vector.load %arg3[%c7_46, %c0_47, %c0_48] : memref<9x8x8xbf16, #tpu.memory_space<vmem>>, vector<1x8x8xbf16>
    %75 = vector.shape_cast %74 : vector<1x8x8xbf16> to vector<8x8xbf16>
    %76 = arith.truncf %73 : vector<8x256xf32> to vector<8x256xbf16>
    %cst_49 = arith.constant dense<0.000000e+00> : vector<8x256xf32>
    %77 = tpu.matmul %75, %76, %cst_49 {dimension_numbers = #tpu.dot_dimension_numbers<[1], [0], [0], [1], [0, 0, 1, 1], [], []>} : vector<8x8xbf16>, vector<8x256xbf16>, vector<8x256xf32> -> vector<8x256xf32>
    %78 = arith.addf %68, %77 : vector<8x256xf32>
    %c239_i32 = arith.constant 239 : i32
    %79 = tpu.dynamic_rotate %1 by %c239_i32 dim 1 : vector<8x256xf32>, i32 -> vector<8x256xf32>
    %c8 = arith.constant 8 : index
    %c0_50 = arith.constant 0 : index
    %c0_51 = arith.constant 0 : index
    %80 = vector.load %arg2[%c8, %c0_50, %c0_51] : memref<9x1x256xf32, #tpu.memory_space<vmem>>, vector<1x1x256xf32>
    %81 = vector.shape_cast %80 : vector<1x1x256xf32> to vector<1x256xf32>
    %82 = vector.broadcast %81 : vector<1x256xf32> to vector<8x256xf32>
    %83 = arith.mulf %79, %82 : vector<8x256xf32>
    %c8_52 = arith.constant 8 : index
    %c0_53 = arith.constant 0 : index
    %c0_54 = arith.constant 0 : index
    %84 = vector.load %arg3[%c8_52, %c0_53, %c0_54] : memref<9x8x8xbf16, #tpu.memory_space<vmem>>, vector<1x8x8xbf16>
    %85 = vector.shape_cast %84 : vector<1x8x8xbf16> to vector<8x8xbf16>
    %86 = arith.truncf %83 : vector<8x256xf32> to vector<8x256xbf16>
    %cst_55 = arith.constant dense<0.000000e+00> : vector<8x256xf32>
    %87 = tpu.matmul %85, %86, %cst_55 {dimension_numbers = #tpu.dot_dimension_numbers<[1], [0], [0], [1], [0, 0, 1, 1], [], []>} : vector<8x8xbf16>, vector<8x256xbf16>, vector<8x256xf32> -> vector<8x256xf32>
    %88 = arith.addf %78, %87 : vector<8x256xf32>
    %89 = vector.broadcast %2 : vector<8x1xf32> to vector<8x256xf32>
    %90 = arith.addf %88, %89 : vector<8x256xf32>
    %cst_56 = arith.constant 0.000000e+00 : f32
    %91 = vector.broadcast %cst_56 : f32 to vector<8x256xf32>
    %92 = arith.maximumf %90, %91 : vector<8x256xf32>
    %c0_57 = arith.constant 0 : index
    %c0_58 = arith.constant 0 : index
    %93 = vector.load %arg6[%c0_57, %c0_58] : memref<8x1xf32, #tpu.memory_space<vmem>>, vector<8x1xf32>
    %cst_59 = arith.constant 0.000000e+00 : f32
    %94 = vector.broadcast %cst_59 : f32 to vector<8x256xf32>
    %c17_i32_60 = arith.constant 17 : i32
    %95 = tpu.dynamic_rotate %92 by %c17_i32_60 dim 1 : vector<8x256xf32>, i32 -> vector<8x256xf32>
    %c0_61 = arith.constant 0 : index
    %c0_62 = arith.constant 0 : index
    %c0_63 = arith.constant 0 : index
    %96 = vector.load %arg2[%c0_61, %c0_62, %c0_63] : memref<9x1x256xf32, #tpu.memory_space<vmem>>, vector<1x1x256xf32>
    %97 = vector.shape_cast %96 : vector<1x1x256xf32> to vector<1x256xf32>
    %98 = vector.broadcast %97 : vector<1x256xf32> to vector<8x256xf32>
    %99 = arith.mulf %95, %98 : vector<8x256xf32>
    %c0_64 = arith.constant 0 : index
    %c0_65 = arith.constant 0 : index
    %c0_66 = arith.constant 0 : index
    %100 = vector.load %arg5[%c0_64, %c0_65, %c0_66] : memref<9x8x8xbf16, #tpu.memory_space<vmem>>, vector<1x8x8xbf16>
    %101 = vector.shape_cast %100 : vector<1x8x8xbf16> to vector<8x8xbf16>
    %102 = arith.truncf %99 : vector<8x256xf32> to vector<8x256xbf16>
    %cst_67 = arith.constant dense<0.000000e+00> : vector<8x256xf32>
    %103 = tpu.matmul %101, %102, %cst_67 {dimension_numbers = #tpu.dot_dimension_numbers<[1], [0], [0], [1], [0, 0, 1, 1], [], []>} : vector<8x8xbf16>, vector<8x256xbf16>, vector<8x256xf32> -> vector<8x256xf32>
    %104 = arith.addf %94, %103 : vector<8x256xf32>
    %c16_i32_68 = arith.constant 16 : i32
    %105 = tpu.dynamic_rotate %92 by %c16_i32_68 dim 1 : vector<8x256xf32>, i32 -> vector<8x256xf32>
    %c1_69 = arith.constant 1 : index
    %c0_70 = arith.constant 0 : index
    %c0_71 = arith.constant 0 : index
    %106 = vector.load %arg2[%c1_69, %c0_70, %c0_71] : memref<9x1x256xf32, #tpu.memory_space<vmem>>, vector<1x1x256xf32>
    %107 = vector.shape_cast %106 : vector<1x1x256xf32> to vector<1x256xf32>
    %108 = vector.broadcast %107 : vector<1x256xf32> to vector<8x256xf32>
    %109 = arith.mulf %105, %108 : vector<8x256xf32>
    %c1_72 = arith.constant 1 : index
    %c0_73 = arith.constant 0 : index
    %c0_74 = arith.constant 0 : index
    %110 = vector.load %arg5[%c1_72, %c0_73, %c0_74] : memref<9x8x8xbf16, #tpu.memory_space<vmem>>, vector<1x8x8xbf16>
    %111 = vector.shape_cast %110 : vector<1x8x8xbf16> to vector<8x8xbf16>
    %112 = arith.truncf %109 : vector<8x256xf32> to vector<8x256xbf16>
    %cst_75 = arith.constant dense<0.000000e+00> : vector<8x256xf32>
    %113 = tpu.matmul %111, %112, %cst_75 {dimension_numbers = #tpu.dot_dimension_numbers<[1], [0], [0], [1], [0, 0, 1, 1], [], []>} : vector<8x8xbf16>, vector<8x256xbf16>, vector<8x256xf32> -> vector<8x256xf32>
    %114 = arith.addf %104, %113 : vector<8x256xf32>
    %c15_i32_76 = arith.constant 15 : i32
    %115 = tpu.dynamic_rotate %92 by %c15_i32_76 dim 1 : vector<8x256xf32>, i32 -> vector<8x256xf32>
    %c2_77 = arith.constant 2 : index
    %c0_78 = arith.constant 0 : index
    %c0_79 = arith.constant 0 : index
    %116 = vector.load %arg2[%c2_77, %c0_78, %c0_79] : memref<9x1x256xf32, #tpu.memory_space<vmem>>, vector<1x1x256xf32>
    %117 = vector.shape_cast %116 : vector<1x1x256xf32> to vector<1x256xf32>
    %118 = vector.broadcast %117 : vector<1x256xf32> to vector<8x256xf32>
    %119 = arith.mulf %115, %118 : vector<8x256xf32>
    %c2_80 = arith.constant 2 : index
    %c0_81 = arith.constant 0 : index
    %c0_82 = arith.constant 0 : index
    %120 = vector.load %arg5[%c2_80, %c0_81, %c0_82] : memref<9x8x8xbf16, #tpu.memory_space<vmem>>, vector<1x8x8xbf16>
    %121 = vector.shape_cast %120 : vector<1x8x8xbf16> to vector<8x8xbf16>
    %122 = arith.truncf %119 : vector<8x256xf32> to vector<8x256xbf16>
    %cst_83 = arith.constant dense<0.000000e+00> : vector<8x256xf32>
    %123 = tpu.matmul %121, %122, %cst_83 {dimension_numbers = #tpu.dot_dimension_numbers<[1], [0], [0], [1], [0, 0, 1, 1], [], []>} : vector<8x8xbf16>, vector<8x256xbf16>, vector<8x256xf32> -> vector<8x256xf32>
    %124 = arith.addf %114, %123 : vector<8x256xf32>
    %c1_i32_84 = arith.constant 1 : i32
    %125 = tpu.dynamic_rotate %92 by %c1_i32_84 dim 1 : vector<8x256xf32>, i32 -> vector<8x256xf32>
    %c3_85 = arith.constant 3 : index
    %c0_86 = arith.constant 0 : index
    %c0_87 = arith.constant 0 : index
    %126 = vector.load %arg2[%c3_85, %c0_86, %c0_87] : memref<9x1x256xf32, #tpu.memory_space<vmem>>, vector<1x1x256xf32>
    %127 = vector.shape_cast %126 : vector<1x1x256xf32> to vector<1x256xf32>
    %128 = vector.broadcast %127 : vector<1x256xf32> to vector<8x256xf32>
    %129 = arith.mulf %125, %128 : vector<8x256xf32>
    %c3_88 = arith.constant 3 : index
    %c0_89 = arith.constant 0 : index
    %c0_90 = arith.constant 0 : index
    %130 = vector.load %arg5[%c3_88, %c0_89, %c0_90] : memref<9x8x8xbf16, #tpu.memory_space<vmem>>, vector<1x8x8xbf16>
    %131 = vector.shape_cast %130 : vector<1x8x8xbf16> to vector<8x8xbf16>
    %132 = arith.truncf %129 : vector<8x256xf32> to vector<8x256xbf16>
    %cst_91 = arith.constant dense<0.000000e+00> : vector<8x256xf32>
    %133 = tpu.matmul %131, %132, %cst_91 {dimension_numbers = #tpu.dot_dimension_numbers<[1], [0], [0], [1], [0, 0, 1, 1], [], []>} : vector<8x8xbf16>, vector<8x256xbf16>, vector<8x256xf32> -> vector<8x256xf32>
    %134 = arith.addf %124, %133 : vector<8x256xf32>
    %c4_92 = arith.constant 4 : index
    %c0_93 = arith.constant 0 : index
    %c0_94 = arith.constant 0 : index
    %135 = vector.load %arg5[%c4_92, %c0_93, %c0_94] : memref<9x8x8xbf16, #tpu.memory_space<vmem>>, vector<1x8x8xbf16>
    %136 = vector.shape_cast %135 : vector<1x8x8xbf16> to vector<8x8xbf16>
    %137 = arith.truncf %92 : vector<8x256xf32> to vector<8x256xbf16>
    %cst_95 = arith.constant dense<0.000000e+00> : vector<8x256xf32>
    %138 = tpu.matmul %136, %137, %cst_95 {dimension_numbers = #tpu.dot_dimension_numbers<[1], [0], [0], [1], [0, 0, 1, 1], [], []>} : vector<8x8xbf16>, vector<8x256xbf16>, vector<8x256xf32> -> vector<8x256xf32>
    %139 = arith.addf %134, %138 : vector<8x256xf32>
    %c255_i32_96 = arith.constant 255 : i32
    %140 = tpu.dynamic_rotate %92 by %c255_i32_96 dim 1 : vector<8x256xf32>, i32 -> vector<8x256xf32>
    %c5_97 = arith.constant 5 : index
    %c0_98 = arith.constant 0 : index
    %c0_99 = arith.constant 0 : index
    %141 = vector.load %arg2[%c5_97, %c0_98, %c0_99] : memref<9x1x256xf32, #tpu.memory_space<vmem>>, vector<1x1x256xf32>
    %142 = vector.shape_cast %141 : vector<1x1x256xf32> to vector<1x256xf32>
    %143 = vector.broadcast %142 : vector<1x256xf32> to vector<8x256xf32>
    %144 = arith.mulf %140, %143 : vector<8x256xf32>
    %c5_100 = arith.constant 5 : index
    %c0_101 = arith.constant 0 : index
    %c0_102 = arith.constant 0 : index
    %145 = vector.load %arg5[%c5_100, %c0_101, %c0_102] : memref<9x8x8xbf16, #tpu.memory_space<vmem>>, vector<1x8x8xbf16>
    %146 = vector.shape_cast %145 : vector<1x8x8xbf16> to vector<8x8xbf16>
    %147 = arith.truncf %144 : vector<8x256xf32> to vector<8x256xbf16>
    %cst_103 = arith.constant dense<0.000000e+00> : vector<8x256xf32>
    %148 = tpu.matmul %146, %147, %cst_103 {dimension_numbers = #tpu.dot_dimension_numbers<[1], [0], [0], [1], [0, 0, 1, 1], [], []>} : vector<8x8xbf16>, vector<8x256xbf16>, vector<8x256xf32> -> vector<8x256xf32>
    %149 = arith.addf %139, %148 : vector<8x256xf32>
    %c241_i32_104 = arith.constant 241 : i32
    %150 = tpu.dynamic_rotate %92 by %c241_i32_104 dim 1 : vector<8x256xf32>, i32 -> vector<8x256xf32>
    %c6_105 = arith.constant 6 : index
    %c0_106 = arith.constant 0 : index
    %c0_107 = arith.constant 0 : index
    %151 = vector.load %arg2[%c6_105, %c0_106, %c0_107] : memref<9x1x256xf32, #tpu.memory_space<vmem>>, vector<1x1x256xf32>
    %152 = vector.shape_cast %151 : vector<1x1x256xf32> to vector<1x256xf32>
    %153 = vector.broadcast %152 : vector<1x256xf32> to vector<8x256xf32>
    %154 = arith.mulf %150, %153 : vector<8x256xf32>
    %c6_108 = arith.constant 6 : index
    %c0_109 = arith.constant 0 : index
    %c0_110 = arith.constant 0 : index
    %155 = vector.load %arg5[%c6_108, %c0_109, %c0_110] : memref<9x8x8xbf16, #tpu.memory_space<vmem>>, vector<1x8x8xbf16>
    %156 = vector.shape_cast %155 : vector<1x8x8xbf16> to vector<8x8xbf16>
    %157 = arith.truncf %154 : vector<8x256xf32> to vector<8x256xbf16>
    %cst_111 = arith.constant dense<0.000000e+00> : vector<8x256xf32>
    %158 = tpu.matmul %156, %157, %cst_111 {dimension_numbers = #tpu.dot_dimension_numbers<[1], [0], [0], [1], [0, 0, 1, 1], [], []>} : vector<8x8xbf16>, vector<8x256xbf16>, vector<8x256xf32> -> vector<8x256xf32>
    %159 = arith.addf %149, %158 : vector<8x256xf32>
    %c240_i32_112 = arith.constant 240 : i32
    %160 = tpu.dynamic_rotate %92 by %c240_i32_112 dim 1 : vector<8x256xf32>, i32 -> vector<8x256xf32>
    %c7_113 = arith.constant 7 : index
    %c0_114 = arith.constant 0 : index
    %c0_115 = arith.constant 0 : index
    %161 = vector.load %arg2[%c7_113, %c0_114, %c0_115] : memref<9x1x256xf32, #tpu.memory_space<vmem>>, vector<1x1x256xf32>
    %162 = vector.shape_cast %161 : vector<1x1x256xf32> to vector<1x256xf32>
    %163 = vector.broadcast %162 : vector<1x256xf32> to vector<8x256xf32>
    %164 = arith.mulf %160, %163 : vector<8x256xf32>
    %c7_116 = arith.constant 7 : index
    %c0_117 = arith.constant 0 : index
    %c0_118 = arith.constant 0 : index
    %165 = vector.load %arg5[%c7_116, %c0_117, %c0_118] : memref<9x8x8xbf16, #tpu.memory_space<vmem>>, vector<1x8x8xbf16>
    %166 = vector.shape_cast %165 : vector<1x8x8xbf16> to vector<8x8xbf16>
    %167 = arith.truncf %164 : vector<8x256xf32> to vector<8x256xbf16>
    %cst_119 = arith.constant dense<0.000000e+00> : vector<8x256xf32>
    %168 = tpu.matmul %166, %167, %cst_119 {dimension_numbers = #tpu.dot_dimension_numbers<[1], [0], [0], [1], [0, 0, 1, 1], [], []>} : vector<8x8xbf16>, vector<8x256xbf16>, vector<8x256xf32> -> vector<8x256xf32>
    %169 = arith.addf %159, %168 : vector<8x256xf32>
    %c239_i32_120 = arith.constant 239 : i32
    %170 = tpu.dynamic_rotate %92 by %c239_i32_120 dim 1 : vector<8x256xf32>, i32 -> vector<8x256xf32>
    %c8_121 = arith.constant 8 : index
    %c0_122 = arith.constant 0 : index
    %c0_123 = arith.constant 0 : index
    %171 = vector.load %arg2[%c8_121, %c0_122, %c0_123] : memref<9x1x256xf32, #tpu.memory_space<vmem>>, vector<1x1x256xf32>
    %172 = vector.shape_cast %171 : vector<1x1x256xf32> to vector<1x256xf32>
    %173 = vector.broadcast %172 : vector<1x256xf32> to vector<8x256xf32>
    %174 = arith.mulf %170, %173 : vector<8x256xf32>
    %c8_124 = arith.constant 8 : index
    %c0_125 = arith.constant 0 : index
    %c0_126 = arith.constant 0 : index
    %175 = vector.load %arg5[%c8_124, %c0_125, %c0_126] : memref<9x8x8xbf16, #tpu.memory_space<vmem>>, vector<1x8x8xbf16>
    %176 = vector.shape_cast %175 : vector<1x8x8xbf16> to vector<8x8xbf16>
    %177 = arith.truncf %174 : vector<8x256xf32> to vector<8x256xbf16>
    %cst_127 = arith.constant dense<0.000000e+00> : vector<8x256xf32>
    %178 = tpu.matmul %176, %177, %cst_127 {dimension_numbers = #tpu.dot_dimension_numbers<[1], [0], [0], [1], [0, 0, 1, 1], [], []>} : vector<8x8xbf16>, vector<8x256xbf16>, vector<8x256xf32> -> vector<8x256xf32>
    %179 = arith.addf %169, %178 : vector<8x256xf32>
    %180 = vector.broadcast %93 : vector<8x1xf32> to vector<8x256xf32>
    %181 = arith.addf %179, %180 : vector<8x256xf32>
    %cst_128 = arith.constant 0.000000e+00 : f32
    %182 = vector.broadcast %cst_128 : f32 to vector<8x256xf32>
    %183 = arith.maximumf %181, %182 : vector<8x256xf32>
    %c0_129 = arith.constant 0 : index
    %c0_130 = arith.constant 0 : index
    %c0_131 = arith.constant 0 : index
    %184 = vector.load %arg7[%c0_129, %c0_130, %c0_131] : memref<1x8x256xf32, #tpu.memory_space<vmem>>, vector<1x8x256xf32>
    %185 = vector.shape_cast %184 : vector<1x8x256xf32> to vector<8x256xf32>
    %186 = vector.shape_cast %183 : vector<8x256xf32> to vector<1x8x256xf32>
    tpu.vector_store %arg7[%c0_129, %c0_130, %c0_131], %186 {strides = array<i32>} : memref<1x8x256xf32, #tpu.memory_space<vmem>>, vector<1x8x256xf32>,
    return
  }
  func.func @transform_0(%arg0: i32) -> (i32, i32, i32) {
    %c0_i32 = arith.constant 0 : i32
    %c0_i32_0 = arith.constant 0 : i32
    %c0_i32_1 = arith.constant 0 : i32
    return %arg0, %c0_i32, %c0_i32_0 : i32, i32, i32
  }
  func.func @transform_1(%arg0: i32) -> (i32, i32, i32) {
    %c0_i32 = arith.constant 0 : i32
    %c0_i32_0 = arith.constant 0 : i32
    %c0_i32_1 = arith.constant 0 : i32
    %c0_i32_2 = arith.constant 0 : i32
    return %c0_i32, %c0_i32_0, %c0_i32_1 : i32, i32, i32
  }
  func.func @transform_2(%arg0: i32) -> (i32, i32, i32) {
    %c0_i32 = arith.constant 0 : i32
    %c0_i32_0 = arith.constant 0 : i32
    %c0_i32_1 = arith.constant 0 : i32
    %c0_i32_2 = arith.constant 0 : i32
    return %c0_i32, %c0_i32_0, %c0_i32_1 : i32, i32, i32
  }
  func.func @transform_3(%arg0: i32) -> (i32, i32) {
    %c0_i32 = arith.constant 0 : i32
    %c0_i32_0 = arith.constant 0 : i32
    %c0_i32_1 = arith.constant 0 : i32
    return %c0_i32, %c0_i32_0 : i32, i32
  }
  func.func @transform_4(%arg0: i32) -> (i32, i32, i32) {
    %c0_i32 = arith.constant 0 : i32
    %c0_i32_0 = arith.constant 0 : i32
    %c0_i32_1 = arith.constant 0 : i32
    %c0_i32_2 = arith.constant 0 : i32
    return %c0_i32, %c0_i32_0, %c0_i32_1 : i32, i32, i32
  }
  func.func @transform_5(%arg0: i32) -> (i32, i32) {
    %c0_i32 = arith.constant 0 : i32
    %c0_i32_0 = arith.constant 0 : i32
    %c0_i32_1 = arith.constant 0 : i32
    return %c0_i32, %c0_i32_0 : i32, i32
  }
  func.func @transform_6(%arg0: i32) -> (i32, i32, i32) {
    %c0_i32 = arith.constant 0 : i32
    %c0_i32_0 = arith.constant 0 : i32
    %c0_i32_1 = arith.constant 0 : i32
    return %arg0, %c0_i32, %c0_i32_0 : i32, i32, i32
  }
}

</mosaic_0001>

<bundles_post_ra>
// kernel: tpu_custom_call.1
= control target key start
LH: loop header
LB: loop body
LE: loop exit
PB: predicated region body
PF: predicated region fallthrough
CT: control target
= control target key end

     0   :  { %11 = vsyncpa [#allocation3], 0  ;;  %s2305_s0 = inlined_call_operand.vmem [shape: f32[2,8,256], index: 0, kind: input, shape index: {}]   ;;  %s2306_s1 = inlined_call_operand.vmem [shape: f32[9,1,256], index: 1, kind: input, shape index: {}]   ;;  %s2307_s2 = inlined_call_operand.vmem [shape: bf16[9,8,8], index: 2, kind: input, shape index: {}]   ;;  %s2308_s3 = inlined_call_operand.vmem [shape: f32[8,1], index: 3, kind: input, shape index: {}]   ;;  %s2309_s4 = inlined_call_operand.vmem [shape: bf16[9,8,8], index: 4, kind: input, shape index: {}]   ;;  %s2310_s5 = inlined_call_operand.vmem [shape: f32[8,1], index: 5, kind: input, shape index: {}]   ;;  %s2311_s6 = inlined_call_operand.hbm [shape: f32[2,8,256], index: 6, kind: output, shape index: {}]  }
   0x1   :  { %13 = vsyncpa [#allocation3 + $0x1], 0  ;;  %s1819_s21 = smov 0   ;;  %s1821_s22 = smov 0  }
   0x2   :  { %s1823_s23 = smov 0   ;;  %s1825_s24 = smov 0  }
   0x3 LB: > { %s1840_s25 = sadd.s32 4294967295, %s1772_s24   ;;  %s1590_s26 = sadd.s32 4294967294, %s1772_s24   ;;  %s1772_s24 = sphi %s1825_s24, %s2317_s24   ;;  %s1768_s23 = sphi %s1823_s23, %s2316_s23   ;;  %s1764_s22 = sphi %s1821_s22, %s2315_s22   ;;  %s1760_s21 = sphi %s1819_s21, %s2314_s21  }
   0x4   : > { %s1844_s27 = sadd.s32 1, %s1772_s24   ;;  %s157_s28 = sadd.s32 1, %s1768_s23 }
   0x5   : > { %s154_s29 = ssub.s32 %s1772_s24, %s1844_s27  ;;  %p167_p0 = scmp.ne.s32.totalorder %s1768_s23, %s1764_s22 }
   0x6   : > { %p155_p1 = scmp.eq.s32.totalorder %s154_s29, 0  ;;  %p168_p2 = scmp.eq.s32.totalorder %s1840_s25, 1 }
   0x7   : > { %p173_p3 = scmp.ne.s32.totalorder %s1764_s22, %s1760_s21  ;;  %p174_p4 = scmp.eq.s32.totalorder %s1590_s26, 1 }
   0x8   : > { %s1855_s30 = scalar_select %p155_p1, %s1768_s23, %s157_s28  }
   0x9   : > { %p1857_p5 = por %p168_p2, %p167_p0  ;;  %p1861_p6 = por %p174_p4, %p173_p3 }
   0xa   : > { %p1593_p7 = scmp.ge.s32.totalorder %s1772_s24, 1  ;;  %p215_p8 = scmp.lt.s32.totalorder %s1772_s24, 3 }
   0xc   : > { %p216_p9 = pnand %p1593_p7, %p215_p8 }
   0xd   : > { %p245_p10 = scmp.lt.s32.totalorder (!%p216_p9), %s1840_s25, 1  ;;  %s1775_s14 = smov (!%p216_p9), 17  }
   0xe   : > { %219 = sbr.rel (%p216_p9) target bundleno = 757 (0x2f5), region = 44  ;;  %s1776_s15 = smov (!%p216_p9), 16  }
   0xf   : > { %s1777_s16 = smov (!%p216_p9), 15   ;;  %s1778_s17 = smov (!%p216_p9), 1  }
  0x10   : > { %s1779_s18 = smov (!%p216_p9), 127   ;;  %s1780_s19 = smov (!%p216_p9), 113  }
  0x11   : > { %s1781_s20 = smov (!%p216_p9), 112   ;;  %s1782_s26 = smov (!%p216_p9), 111  }
  0x13   : > { %s246_s9 = scalar_select %p245_p10, %s1840_s25, 1  ;;  %v1774_v1 = vmov 0   ;;  %v253_v3 = vld [vmem:[%s2308_s3] sm:$0xff]  ;;  %v258_v4 = vlaneseq  ;;  %vm310_vm3 = vcmask 1043456   ;;  %v1614_v45 = vld [vmem:[%s2306_s1 + $0xa] sm:$0x3] }
  0x14   : > { %349 = vmatprep.mubr.bf16.mxu0 %v1774_v1  ;;  %399 = vmatprep.mubr.bf16.mxu1 %v1774_v1  ;;  %v263_v9 = vld [vmem:[%s2306_s1] sm:$0x3]  ;;  %v1597_v10 = vld [vmem:[%s2306_s1 + $0x2] sm:$0x3]  ;;  %v1603_v13 = vld [vmem:[%s2306_s1 + $0x4] sm:$0x3] }
  0x15   : > { %s1661_s10 = sshll.u32 %s246_s9, 4  ;;  %1711 = vset.pattern.permute.xlu0 %v1774_v1  ;;  %v266_v5 = vshrl.u32 %v258_v4, 7  ;;  %v1914_v6 = vand.u32 127, %v258_v4  ;;  %v1607_v30 = vld [vmem:[%s2306_s1 + $0x6] sm:$0x3]  ;;  %vm306_vm5 = vcmask 64512  }
  0x16   : > { %s249_s13 = scalar_lea.vmem %s2305_s0, %s1661_s10  ;;  %v1598_v46 = vld [vmem:[%s2307_s2 + $0x4] sm:$0xf]  ;;  %v277_v47 = vld [vmem:[%s2307_s2] sm:$0xf]  ;;  %v1618_v60 = vld [vmem:[%s2306_s1 + $0xc] sm:$0x3] }
  0x17   : > { %v1872_v0 = vld [vmem:[%s249_s13] sm:$0xff]  ;;  %v1879_v2 = vld [vmem:[%s249_s13 + $0x8] sm:$0xff]  ;;  %v1916_v7 = vsub.s32 0, %v266_v5  ;;  %v1918_v8 = vsub.s32 1, %v266_v5  ;;  %vm260_vm0 = vcmp.lt.s32.totalorder %v1914_v6, 17  ;;  %vm284_vm1 = vcmp.lt.s32.totalorder %v1914_v6, 16 }
  0x18   : > { %254 = vrot.lane.b32.xlu1 %v1872_v0, %s1775_s14  ;;  %280 = vrot.lane.b32.xlu0 %v1872_v0, %s1776_s15  ;;  %vm412_vm2 = vcmp.lt.s32.totalorder %v1914_v6, 15  ;;  %vm490_vm4 = vcmp.lt.s32.totalorder %v1914_v6, 1  ;;  %vm624_vm6 = vcmp.lt.s32.totalorder %v1914_v6, 127  ;;  %v567_v55 = vpack.c.bf16 %v1879_v2, %v1879_v2 }
  0x19   : > { %v1932_v14 = vrot.slane %v263_v9, %v1916_v7  ;;  %v1935_v15 = vrot.slane %v1597_v10, %v1916_v7  ;;  %v1938_v16 = vrot.slane %v1597_v10, %v1918_v8  ;;  %v1941_v17 = vrot.slane %v263_v9, %v1918_v8 }
  0x1a   : > { %v1945_v20 = vrot.slane %v1603_v13, %v1916_v7  ;;  %v1948_v21 = vrot.slane %v1603_v13, %v1918_v8  ;;  %v1971_v39 = vrot.slane %v1607_v30, %v1916_v7  ;;  %v1974_v40 = vrot.slane %v1607_v30, %v1918_v8  ;;  %v1622_v13 = vld [vmem:[%s2306_s1 + $0xe] sm:$0x3] }
  0x1b   : > { %v1997_v54 = vrot.slane %v1614_v45, %v1916_v7  ;;  %v2007_v59 = vrot.slane %v1614_v45, %v1918_v8  ;;  %vm702_vm7 = vcmp.lt.s32.totalorder %v1914_v6, 113  ;;  %v2023_v9 = vrot.slane %v1618_v60, %v1916_v7 }
  0x1c   : > { %256 = vrot.lane.b32.xlu1 %v1879_v2, %s1775_s14  ;;  %282 = vrot.lane.b32.xlu0 %v1879_v2, %s1776_s15  ;;  %vm780_vm8 = vcmp.lt.s32.totalorder %v1914_v6, 112  ;;  %vm858_vm9 = vcmp.lt.s32.totalorder %v1914_v6, 111 }
  0x20   : > { %410 = vrot.lane.b32.xlu1 %v1879_v2, %s1777_s16  ;;  %408 = vrot.lane.b32.xlu0 %v1872_v0, %s1777_s16 }
  0x24   : > { %488 = vrot.lane.b32.xlu1 %v1879_v2, %s1778_s17  ;;  %486 = vrot.lane.b32.xlu0 %v1872_v0, %s1778_s17 }
  0x28   : > { %622 = vrot.lane.b32.xlu1 %v1879_v2, %s1779_s18  ;;  %620 = vrot.lane.b32.xlu0 %v1872_v0, %s1779_s18 }
  0x2c   : > { %700 = vrot.lane.b32.xlu1 %v1879_v2, %s1780_s19  ;;  %698 = vrot.lane.b32.xlu0 %v1872_v0, %s1780_s19 }
  0x30   : > { %778 = vrot.lane.b32.xlu1 %v1879_v2, %s1781_s20  ;;  %776 = vrot.lane.b32.xlu0 %v1872_v0, %s1781_s20 }
  0x34   : > { %856 = vrot.lane.b32.xlu1 %v1879_v2, %s1782_s26  ;;  %854 = vrot.lane.b32.xlu0 %v1872_v0, %s1782_s26 }
  0x38   : > { %934 = vperm.xlu0 %1711, %v253_v3   ;;  %v566_v3 = vpack.c.bf16 %v1872_v0, %v1872_v0 }
  0x8a   : > { %v255_v11 = vpop.permute.xlu1 %254  ;;  %v281_v12 = vpop.permute.xlu0 %280 }
  0x8e   : > { %v257_v18 = vpop.permute.xlu1 %256  ;;  %v283_v19 = vpop.permute.xlu0 %282 }
  0x8f   : > { %v261_v22 = vsel %vm260_vm0, %v255_v11, %v257_v18  ;;  %v262_v23 = vsel %vm260_vm0, %v257_v18, %v255_v11  ;;  %v285_v24 = vsel %vm284_vm1, %v281_v12, %v283_v19  ;;  %v286_v25 = vsel %vm284_vm1, %v283_v19, %v281_v12  ;;  %v1604_v18 = vld [vmem:[%s2307_s2 + $0x8] sm:$0xf]  ;;  %v1608_v19 = vld [vmem:[%s2307_s2 + $0xc] sm:$0xf] }
  0x90   : > { %v275_v26 = vmul.f32 %v1932_v14, %v262_v23  ;;  %v300_v27 = vmul.f32 %v1935_v15, %v286_v25  ;;  %v301_v28 = vmul.f32 %v1938_v16, %v285_v24  ;;  %v276_v29 = vmul.f32 %v1941_v17, %v261_v22 }
  0x91   : > { %v2031_v12 = vrot.slane %v1618_v60, %v1918_v8 }
  0x92   : > { %v411_v31 = vpop.permute.xlu1 %410  ;;  %v409_v32 = vpop.permute.xlu0 %408  ;;  %v305_v33 = vpack.c.bf16 %v301_v28, %v301_v28  ;;  %v279_v34 = vpack.c.bf16 %v276_v29, %v276_v29  ;;  %v304_v35 = vpack.c.bf16 %v300_v27, %v300_v27  ;;  %v278_v36 = vpack.c.bf16 %v275_v26, %v275_v26 }
  0x93   : > { %v413_v37 = vsel %vm412_vm2, %v409_v32, %v411_v31  ;;  %v414_v38 = vsel %vm412_vm2, %v411_v31, %v409_v32  ;;  %v572_v26 = vsel %vm310_vm3, %v566_v3, 0  ;;  %v2049_v29 = vrot.slane %v1622_v13, %v1916_v7 }
  0x94   : > { %v428_v41 = vmul.f32 %v1945_v20, %v414_v38  ;;  %v429_v42 = vmul.f32 %v1948_v21, %v413_v37  ;;  %1599 = vmatprep.subr.msk.bf16.mxu0 %vm310_vm3, %v305_v33  ;;  %1601 = vmatprep.subr.msk.bf16.mxu1 %vm310_vm3, %v279_v34  ;;  %v312_v43 = vsel %vm310_vm3, %v304_v35, 0  ;;  %v362_v44 = vsel %vm310_vm3, %v278_v36, 0  ;;  %v1626_v34 = vld [vmem:[%s2306_s1 + $0x10] sm:$0x3] }
  0x95   : > { %332 = vmatpush1.bf16.msra.mxu0 %v312_v43  ;;  %382 = vmatpush1.bf16.msra.mxu1 %v362_v44  ;;  %v2057_v33 = vrot.slane %v1622_v13, %v1918_v8  ;;  %v2074_v45 = vrot.slane %v1626_v34, %v1916_v7 }
  0x96   : > { %v432_v48 = vpack.c.bf16 %v428_v41, %v428_v41  ;;  %v433_v49 = vpack.c.bf16 %v429_v42, %v429_v42  ;;  %v489_v50 = vpop.permute.xlu1 %488  ;;  %v487_v51 = vpop.permute.xlu0 %486 }
  0x97   : > { %v491_v52 = vsel %vm490_vm4, %v487_v51, %v489_v50  ;;  %v492_v53 = vsel %vm490_vm4, %v489_v50, %v487_v51 }
  0x98   : > { %v506_v56 = vmul.f32 %v1971_v39, %v492_v53  ;;  %v507_v57 = vmul.f32 %v1974_v40, %v491_v52  ;;  %1600 = vmatmul.mubr.msk.bf16.vlgmr.msra.gmra.mxu0 %vm306_vm5, %v1598_v46  ;;  %1602 = vmatmul.mubr.msk.bf16.vlgmr.msra.gmra.mxu1 %vm306_vm5, %v277_v47  ;;  %v438_v58 = vsel %vm310_vm3, %v432_v48, 0  ;;  %v2077_v46 = vrot.slane %v1626_v34, %v1918_v8  ;;  %v1611_v47 = vld [vmem:[%s2307_s2 + $0x10] sm:$0xf]  ;;  %v1615_v48 = vld [vmem:[%s2307_s2 + $0x14] sm:$0xf] }
  0x99   : > { %1605 = vmatprep.subr.msk.bf16.mxu0 %vm310_vm3, %v433_v49  ;;  %475 = vmatprep.mubr.bf16.mxu0 %v1774_v1 }
  0x9a   : > { %v510_v61 = vpack.c.bf16 %v506_v56, %v506_v56  ;;  %v511_v62 = vpack.c.bf16 %v507_v57, %v507_v57  ;;  %458 = vmatpush1.bf16.msra.mxu0 %v438_v58  ;;  %v623_v63 = vpop.permute.xlu1 %622  ;;  %v621_v2 = vpop.permute.xlu0 %620  ;;  %553 = vmatprep.mubr.bf16.mxu1 %v1774_v1 }
  0x9b   : > { %v625_v4 = vsel %vm624_vm6, %v621_v2, %v623_v63  ;;  %v626_v5 = vsel %vm624_vm6, %v623_v63, %v621_v2  ;;  %1612 = vmatprep.subr.msk.bf16.mxu0 %vm310_vm3, %v567_v55  ;;  %v1627_v2 = vld [vmem:[%s2307_s2 + $0x20] sm:$0xf] }
  0x9c   : > { %1609 = vmatprep.subr.msk.bf16.mxu1 %vm310_vm3, %v511_v62  ;;  %v516_v10 = vsel %vm310_vm3, %v510_v61, 0  ;;  %v640_v11 = vmul.f32 %v1997_v54, %v625_v4  ;;  %v641_v0 = vmul.f32 %v2007_v59, %v626_v5  ;;  %v1619_v61 = vld [vmem:[%s2307_s2 + $0x18] sm:$0xf]  ;;  %v1623_v62 = vld [vmem:[%s2307_s2 + $0x1c] sm:$0xf] }
  0x9d   : > { %536 = vmatpush1.bf16.msra.mxu1 %v516_v10 }
  0x9e   : > { %v644_v22 = vpack.c.bf16 %v640_v11, %v640_v11  ;;  %v645_v23 = vpack.c.bf16 %v641_v0, %v641_v0  ;;  %v701_v24 = vpop.permute.xlu1 %700  ;;  %v699_v25 = vpop.permute.xlu0 %698 }
  0x9f   : > { %v703_v27 = vsel %vm702_vm7, %v699_v25, %v701_v24  ;;  %v704_v28 = vsel %vm702_vm7, %v701_v24, %v699_v25 }
  0xa0   : > { %1606 = vmatmul.mubr.msk.bf16.vlgmr.msra.gmra.mxu0 %vm306_vm5, %v1604_v18  ;;  %1610 = vmatmul.mubr.msk.bf16.vlgmr.msra.gmra.mxu1 %vm306_vm5, %v1608_v19  ;;  %v718_v30 = vmul.f32 %v2023_v9, %v703_v27  ;;  %v719_v31 = vmul.f32 %v2031_v12, %v704_v28  ;;  %v650_v32 = vsel %vm310_vm3, %v644_v22, 0 }
  0xa1   : > { %1616 = vmatprep.subr.msk.bf16.mxu1 %vm310_vm3, %v645_v23  ;;  %592 = vmatpush1.bf16.msra.mxu0 %v572_v26 }
  0xa2   : > { %v722_v35 = vpack.c.bf16 %v718_v30, %v718_v30  ;;  %v723_v36 = vpack.c.bf16 %v719_v31, %v719_v31  ;;  %670 = vmatpush1.bf16.msra.mxu1 %v650_v32  ;;  %v779_v37 = vpop.permute.xlu1 %778  ;;  %v777_v38 = vpop.permute.xlu0 %776  ;;  %609 = vmatprep.mubr.bf16.mxu0 %v1774_v1 }
  0xa3   : > { %v781_v41 = vsel %vm780_vm8, %v777_v38, %v779_v37  ;;  %v782_v42 = vsel %vm780_vm8, %v779_v37, %v777_v38  ;;  %687 = vmatprep.mubr.bf16.mxu1 %v1774_v1 }
  0xa4   : > { %v796_v43 = vmul.f32 %v2049_v29, %v781_v41  ;;  %v797_v44 = vmul.f32 %v2057_v33, %v782_v42  ;;  %1620 = vmatprep.subr.msk.bf16.mxu0 %vm310_vm3, %v723_v36  ;;  %v728_v51 = vsel %vm310_vm3, %v722_v35, 0 }
  0xa6   : > { %v800_v49 = vpack.c.bf16 %v796_v43, %v796_v43  ;;  %v801_v50 = vpack.c.bf16 %v797_v44, %v797_v44  ;;  %v857_v52 = vpop.permute.xlu1 %856  ;;  %v855_v53 = vpop.permute.xlu0 %854 }
  0xa7   : > { %v859_v7 = vsel %vm858_vm9, %v855_v53, %v857_v52  ;;  %v860_v8 = vsel %vm858_vm9, %v857_v52, %v855_v53 }
  0xa8   : > { %1613 = vmatmul.mubr.msk.bf16.vlgmr.msra.gmra.mxu0 %vm306_vm5, %v1611_v47  ;;  %1617 = vmatmul.mubr.msk.bf16.vlgmr.msra.gmra.mxu1 %vm306_vm5, %v1615_v48  ;;  %v806_v55 = vsel %vm310_vm3, %v800_v49, 0  ;;  %v874_v56 = vmul.f32 %v2074_v45, %v859_v7  ;;  %v875_v57 = vmul.f32 %v2077_v46, %v860_v8 }
  0xa9   : > { %1624 = vmatprep.subr.msk.bf16.mxu1 %vm310_vm3, %v801_v50  ;;  %748 = vmatpush1.bf16.msra.mxu0 %v728_v51 }
  0xaa   : > { %826 = vmatpush1.bf16.msra.mxu1 %v806_v55  ;;  %v878_v58 = vpack.c.bf16 %v874_v56, %v874_v56  ;;  %v879_v60 = vpack.c.bf16 %v875_v57, %v875_v57  ;;  %765 = vmatprep.mubr.bf16.mxu0 %v1774_v1 }
  0xab   : > { %843 = vmatprep.mubr.bf16.mxu1 %v1774_v1 }
  0xac   : > { %1628 = vmatprep.subr.msk.bf16.mxu0 %vm310_vm3, %v879_v60  ;;  %v884_v63 = vsel %vm310_vm3, %v878_v58, 0 }
  0xb0   : > { %1621 = vmatmul.mubr.msk.bf16.vlgmr.msra.gmra.mxu0 %vm306_vm5, %v1619_v61  ;;  %1625 = vmatmul.mubr.msk.bf16.vlgmr.msra.gmra.mxu1 %vm306_vm5, %v1623_v62 }
  0xb1   : > { %904 = vmatpush1.bf16.msra.mxu0 %v884_v63  ;;  %921 = vmatprep.mubr.bf16.mxu0 %v1774_v1 }
  0xb2   : > { %1006 = vmatprep.mubr.bf16.mxu1 %v1774_v1 }
  0xb8   : > { %1629 = vmatmul.mubr.msk.bf16.vlgmr.msra.gmra.mxu0 %vm306_vm5, %v1627_v2 }
  0xb9   : > { %1056 = vmatprep.mubr.bf16.mxu0 %v1774_v1 }
 0x158   : > { %v351_v3 = vpop.f32.mrf.mxu0  ;;  %v401_v4 = vpop.f32.mrf.mxu1 }
 0x159   : > { %v402_v27 = vadd.f32 %v401_v4, %v351_v3  ;;  %v935_v3 = vpop.permute.xlu0 %934 }
 0x15a   : > { %v353_v5 = vpop.f32.mrf.mxu0  ;;  %v403_v10 = vpop.f32.mrf.mxu1 }
 0x15b   : > { %v404_v31 = vadd.f32 %v403_v10, %v353_v5 }
 0x15c   : > { %v355_v11 = vpop.f32.mrf.mxu0  ;;  %v405_v0 = vpop.f32.mrf.mxu1 }
 0x15e   : > { %v356_v13 = vpop.f32.mrf.mxu0  ;;  %v406_v18 = vpop.f32.mrf.mxu1 }
 0x160   : > { %v477_v19 = vpop.f32.mrf.mxu0  ;;  %v555_v22 = vpop.f32.mrf.mxu1 }
 0x161   : > { %v484_v32 = vadd.f32 %v477_v19, %v402_v27 }
 0x162   : > { %v479_v23 = vpop.f32.mrf.mxu0  ;;  %v557_v24 = vpop.f32.mrf.mxu1 }
 0x163   : > { %v485_v36 = vadd.f32 %v479_v23, %v404_v31  ;;  %v562_v41 = vadd.f32 %v555_v22, %v484_v32 }
 0x164   : > { %v481_v25 = vpop.f32.mrf.mxu0  ;;  %v559_v26 = vpop.f32.mrf.mxu1 }
 0x165   : > { %v563_v44 = vadd.f32 %v557_v24, %v485_v36  ;;  %v941_v24 = vld [vmem:[%s2310_s5] sm:$0xff] }
 0x166   : > { %v482_v28 = vpop.f32.mrf.mxu0  ;;  %v560_v30 = vpop.f32.mrf.mxu1 }
 0x168   : > { %v611_v34 = vpop.f32.mrf.mxu0  ;;  %v689_v35 = vpop.f32.mrf.mxu1 }
 0x169   : > { %v618_v47 = vadd.f32 %v611_v34, %v562_v41 }
 0x16a   : > { %v613_v37 = vpop.f32.mrf.mxu0  ;;  %v691_v38 = vpop.f32.mrf.mxu1 }
 0x16b   : > { %v619_v50 = vadd.f32 %v613_v37, %v563_v44  ;;  %v696_v53 = vadd.f32 %v689_v35, %v618_v47 }
 0x16c   : > { %v615_v42 = vpop.f32.mrf.mxu0  ;;  %v693_v43 = vpop.f32.mrf.mxu1 }
 0x16d   : > { %v697_v55 = vadd.f32 %v691_v38, %v619_v50 }
 0x16e   : > { %v616_v48 = vpop.f32.mrf.mxu0  ;;  %v694_v49 = vpop.f32.mrf.mxu1 }
 0x170   : > { %v767_v51 = vpop.f32.mrf.mxu0  ;;  %v845_v52 = vpop.f32.mrf.mxu1 }
 0x171   : > { %v774_v56 = vadd.f32 %v767_v51, %v696_v53 }
 0x172   : > { %v769_v7 = vpop.f32.mrf.mxu0  ;;  %v847_v8 = vpop.f32.mrf.mxu1 }
 0x173   : > { %v775_v60 = vadd.f32 %v769_v7, %v697_v55  ;;  %v852_v63 = vadd.f32 %v845_v52, %v774_v56  ;;  %v950_v7 = vld [vmem:[%s2309_s4] sm:$0xf] }
 0x174   : > { %v771_v57 = vpop.f32.mrf.mxu0  ;;  %v849_v58 = vpop.f32.mrf.mxu1 }
 0x175   : > { %v853_v4 = vadd.f32 %v847_v8, %v775_v60 }
 0x176   : > { %v772_v61 = vpop.f32.mrf.mxu0  ;;  %v850_v62 = vpop.f32.mrf.mxu1 }
 0x178   : > { %v923_v2 = vpop.f32.mrf.mxu0 }
 0x179   : > { %v930_v5 = vadd.f32 %v923_v2, %v852_v63  ;;  %v1635_v63 = vld [vmem:[%s2309_s4 + $0x8] sm:$0xf] }
 0x17a   : > { %v925_v10 = vpop.f32.mrf.mxu0 }
 0x17b   : > { %v937_v11 = vadd.f32 %v935_v3, %v930_v5  ;;  %v931_v0 = vadd.f32 %v925_v10, %v853_v4 }
 0x17c   : > { %v927_v13 = vpop.f32.mrf.mxu0 }
 0x17d   : > { %v2115_v18 = vmax.f32 %v937_v11, 0.0  ;;  %v938_v19 = vadd.f32 %v935_v3, %v931_v0 }
 0x17e   : > { %v928_v22 = vpop.f32.mrf.mxu0 }
 0x17f   : > { %942 = vrot.lane.b32.xlu0 %v2115_v18, %s1775_s14  ;;  %953 = vrot.lane.b32.xlu1 %v2115_v18, %s1776_s15  ;;  %v2121_v23 = vmax.f32 %v938_v19, 0.0  ;;  %v1195_v57 = vpack.c.bf16 %v2115_v18, %v2115_v18 }
 0x181   : > { %v1196_v62 = vpack.c.bf16 %v2121_v23, %v2121_v23  ;;  %v1201_v13 = vsel %vm310_vm3, %v1195_v57, 0 }
 0x183   : > { %1065 = vrot.lane.b32.xlu0 %v2115_v18, %s1777_s16  ;;  %955 = vrot.lane.b32.xlu1 %v2121_v23, %s1776_s15 }
 0x187   : > { %1129 = vrot.lane.b32.xlu0 %v2115_v18, %s1778_s17  ;;  %944 = vrot.lane.b32.xlu1 %v2121_v23, %s1775_s14 }
 0x18b   : > { %1249 = vrot.lane.b32.xlu0 %v2115_v18, %s1779_s18  ;;  %1067 = vrot.lane.b32.xlu1 %v2121_v23, %s1777_s16 }
 0x18f   : > { %1313 = vrot.lane.b32.xlu0 %v2115_v18, %s1780_s19  ;;  %1131 = vrot.lane.b32.xlu1 %v2121_v23, %s1778_s17 }
 0x193   : > { %1377 = vrot.lane.b32.xlu0 %v2115_v18, %s1781_s20  ;;  %1251 = vrot.lane.b32.xlu1 %v2121_v23, %s1779_s18 }
 0x197   : > { %1441 = vrot.lane.b32.xlu0 %v2115_v18, %s1782_s26  ;;  %1315 = vrot.lane.b32.xlu1 %v2121_v23, %s1780_s19  ;;  %v1638_v18 = vld [vmem:[%s2309_s4 + $0xc] sm:$0xf]  ;;  %s242_s19 = sand.u32 1, %s1764_s22  }
 0x198   : > { %s1517_s13 = scalar_lea.sflag [#allocation3], %s242_s19 }
 0x19b   : > { %1507 = vperm.xlu0 %1711, %v941_v24   ;;  %1379 = vrot.lane.b32.xlu1 %v2121_v23, %s1781_s20  ;;  %s1594_s20 = sshll.u32 %s242_s19, 4 }
 0x19c   : > { %s244_s29 = scalar_lea.vmem [#allocation2], %s1594_s20 }
 0x19d   : > { %s1531_s9 = sshll.u32 %s244_s29, 4  ;;  %s1532_s9 = int_to_ptr.vmem [resolvable:$true] %s1531_s9 }
 0x19e   : > { %s1712_s28 = scalar_lea.vmem %s1532_s9, 256 }
 0x19f   : > { %1443 = vrot.lane.b32.xlu1 %v2121_v23, %s1782_s26  ;;  %s1662_s26 = sshll.u32 %s1840_s25, 8  ;;  %p1713_p11 = scmp.ne.s32.totalorder %s1532_s9, %s1712_s28 }
 0x1a0   : > { %s1529_s12 = scalar_lea.hbm %s2311_s6, %s1662_s26  ;;  %s1783_s25 = smov [#allocation2]  }
 0x1a1   : > { %p1714_p12 = pnand %p1713_p11, %p1857_p5  ;;  %s1716_s14 = sshll.u32 %s1783_s25, 4  ;;  %s1717_s14 = int_to_ptr.vmem [resolvable:$false] %s1716_s14 }
 0x1a2   : > { %s1718_s15 = scalar_lea.vmem %s1717_s14, 512  ;;  %p1719_p0 = scmp.lt.s32.totalorder %s1532_s9, %s1717_s14 }
 0x1a3   : > { %p1715_p13 = pneg %p1714_p12  ;;  %p1720_p1 = scmp.lt.s32.totalorder %s1718_s15, %s1712_s28 }
 0x1a5   : > { %p1721_p2 = por %p1720_p1, %p1719_p0 }
 0x1a7   : > { %p1722_p3 = pnand %p1721_p2, %p1715_p13 }
 0x1f1   : > { %v943_v25 = vpop.permute.xlu0 %942  ;;  %v954_v26 = vpop.permute.xlu1 %953 }
 0x1f5   : > { %v1066_v27 = vpop.permute.xlu0 %1065  ;;  %v956_v28 = vpop.permute.xlu1 %955 }
 0x1f6   : > { %v957_v30 = vsel %vm284_vm1, %v954_v26, %v956_v28  ;;  %v958_v31 = vsel %vm284_vm1, %v956_v28, %v954_v26  ;;  %v1641_v28 = vld [vmem:[%s2309_s4 + $0x10] sm:$0xf] }
 0x1f7   : > { %v959_v32 = vmul.f32 %v958_v31, %v1935_v15  ;;  %v960_v34 = vmul.f32 %v957_v30, %v1938_v16  ;;  %v1630_v16 = vld [vmem:[%s2309_s4 + $0x4] sm:$0xf] }
 0x1f9   : > { %v963_v35 = vpack.c.bf16 %v959_v32, %v959_v32  ;;  %v964_v36 = vpack.c.bf16 %v960_v34, %v960_v34  ;;  %v1130_v37 = vpop.permute.xlu0 %1129  ;;  %v945_v38 = vpop.permute.xlu1 %944 }
 0x1fa   : > { %v946_v41 = vsel %vm260_vm0, %v943_v25, %v945_v38  ;;  %v947_v42 = vsel %vm260_vm0, %v945_v38, %v943_v25 }
 0x1fb   : > { %v948_v43 = vmul.f32 %v947_v42, %v1932_v14  ;;  %v949_v44 = vmul.f32 %v946_v41, %v1941_v17  ;;  %1631 = vmatprep.subr.msk.bf16.mxu1 %vm310_vm3, %v964_v36  ;;  %v969_v15 = vsel %vm310_vm3, %v963_v35, 0 }
 0x1fc   : > { %989 = vmatpush1.bf16.msra.mxu1 %v969_v15 }
 0x1fd   : > { %v951_v47 = vpack.c.bf16 %v948_v43, %v948_v43  ;;  %v952_v48 = vpack.c.bf16 %v949_v44, %v949_v44  ;;  %v1068_v49 = vpop.permute.xlu1 %1067  ;;  %v1250_v51 = vpop.permute.xlu0 %1249 }
 0x1fe   : > { %v1069_v50 = vsel %vm412_vm2, %v1066_v27, %v1068_v49  ;;  %v1070_v14 = vsel %vm412_vm2, %v1068_v49, %v1066_v27  ;;  %v1653_v49 = vld [vmem:[%s2309_s4 + $0x20] sm:$0xf] }
 0x1ff   : > { %v1071_v17 = vmul.f32 %v1070_v14, %v1945_v20  ;;  %v1072_v52 = vmul.f32 %v1069_v50, %v1948_v21  ;;  %1632 = vmatmul.mubr.msk.bf16.vlgmr.msra.gmra.mxu1 %vm306_vm5, %v1630_v16  ;;  %1633 = vmatprep.subr.msk.bf16.mxu0 %vm310_vm3, %v952_v48  ;;  %v1019_v53 = vsel %vm310_vm3, %v951_v47, 0  ;;  %v1647_v47 = vld [vmem:[%s2309_s4 + $0x18] sm:$0xf] }
 0x200   : > { %1039 = vmatpush1.bf16.msra.mxu0 %v1019_v53  ;;  %1118 = vmatprep.mubr.bf16.mxu1 %v1774_v1 }
 0x201   : > { %v1075_v8 = vpack.c.bf16 %v1071_v17, %v1071_v17  ;;  %v1076_v55 = vpack.c.bf16 %v1072_v52, %v1072_v52  ;;  %v1132_v56 = vpop.permute.xlu1 %1131  ;;  %v1314_v2 = vpop.permute.xlu0 %1313 }
 0x202   : > { %v1133_v20 = vsel %vm490_vm4, %v1130_v37, %v1132_v56  ;;  %v1134_v21 = vsel %vm490_vm4, %v1132_v56, %v1130_v37  ;;  %v1644_v37 = vld [vmem:[%s2309_s4 + $0x14] sm:$0xf] }
 0x203   : > { %v1135_v58 = vmul.f32 %v1134_v21, %v1971_v39  ;;  %v1136_v60 = vmul.f32 %v1133_v20, %v1974_v40  ;;  %1634 = vmatmul.mubr.msk.bf16.vlgmr.msra.gmra.mxu0 %vm306_vm5, %v950_v7  ;;  %1636 = vmatprep.subr.msk.bf16.mxu1 %vm310_vm3, %v1076_v55  ;;  %v1081_v61 = vsel %vm310_vm3, %v1075_v8, 0 }
 0x204   : > { %1101 = vmatpush1.bf16.msra.mxu1 %v1081_v61  ;;  %1182 = vmatprep.mubr.bf16.mxu0 %v1774_v1 }
 0x205   : > { %v1139_v39 = vpack.c.bf16 %v1135_v58, %v1135_v58  ;;  %v1140_v3 = vpack.c.bf16 %v1136_v60, %v1136_v60  ;;  %v1252_v40 = vpop.permute.xlu1 %1251  ;;  %1642 = vmatprep.subr.msk.bf16.mxu1 %vm310_vm3, %v1196_v62  ;;  %v1378_v24 = vpop.permute.xlu0 %1377 }
 0x206   : > { %v1253_v4 = vsel %vm624_vm6, %v1250_v51, %v1252_v40  ;;  %v1254_v5 = vsel %vm624_vm6, %v1252_v40, %v1250_v51 }
 0x207   : > { %v1255_v10 = vmul.f32 %v1253_v4, %v1997_v54  ;;  %v1256_v11 = vmul.f32 %v1254_v5, %v2007_v59  ;;  %1637 = vmatmul.mubr.msk.bf16.vlgmr.msra.gmra.mxu1 %vm306_vm5, %v1635_v63  ;;  %1639 = vmatprep.subr.msk.bf16.mxu0 %vm310_vm3, %v1140_v3  ;;  %v1145_v0 = vsel %vm310_vm3, %v1139_v39, 0 }
 0x208   : > { %1165 = vmatpush1.bf16.msra.mxu0 %v1145_v0  ;;  %1221 = vmatpush1.bf16.msra.mxu1 %v1201_v13 }
 0x209   : > { %v1259_v19 = vpack.c.bf16 %v1255_v10, %v1255_v10  ;;  %v1260_v22 = vpack.c.bf16 %v1256_v11, %v1256_v11  ;;  %v1316_v23 = vpop.permute.xlu1 %1315  ;;  %1238 = vmatprep.mubr.bf16.mxu1 %v1774_v1  ;;  %v1442_v38 = vpop.permute.xlu0 %1441 }
 0x20a   : > { %v1317_v54 = vsel %vm702_vm7, %v1314_v2, %v1316_v23  ;;  %v1318_v59 = vsel %vm702_vm7, %v1316_v23, %v1314_v2 }
 0x20b   : > { %v1319_v25 = vmul.f32 %v1317_v54, %v2023_v9  ;;  %v1320_v26 = vmul.f32 %v1318_v59, %v2031_v12  ;;  %1640 = vmatmul.mubr.msk.bf16.vlgmr.msra.gmra.mxu0 %vm306_vm5, %v1638_v18  ;;  %1645 = vmatprep.subr.msk.bf16.mxu0 %vm310_vm3, %v1260_v22  ;;  %v1265_v27 = vsel %vm310_vm3, %v1259_v19, 0 }
 0x20c   : > { %1285 = vmatpush1.bf16.msra.mxu0 %v1265_v27  ;;  %1302 = vmatprep.mubr.bf16.mxu0 %v1774_v1 }
 0x20d   : > { %v1323_v30 = vpack.c.bf16 %v1319_v25, %v1319_v25  ;;  %v1324_v31 = vpack.c.bf16 %v1320_v26, %v1320_v26  ;;  %v1380_v32 = vpop.permute.xlu1 %1379 }
 0x20e   : > { %v1381_v9 = vsel %vm780_vm8, %v1378_v24, %v1380_v32  ;;  %v1382_v12 = vsel %vm780_vm8, %v1380_v32, %v1378_v24 }
 0x20f   : > { %v1383_v34 = vmul.f32 %v1381_v9, %v2049_v29  ;;  %v1384_v35 = vmul.f32 %v1382_v12, %v2057_v33  ;;  %1643 = vmatmul.mubr.msk.bf16.vlgmr.msra.gmra.mxu1 %vm306_vm5, %v1641_v28  ;;  %1648 = vmatprep.subr.msk.bf16.mxu1 %vm310_vm3, %v1324_v31  ;;  %v1329_v36 = vsel %vm310_vm3, %v1323_v30, 0 }
 0x210   : > { %1349 = vmatpush1.bf16.msra.mxu1 %v1329_v36  ;;  %1366 = vmatprep.mubr.bf16.mxu1 %v1774_v1 }
 0x211   : > { %v1387_v41 = vpack.c.bf16 %v1383_v34, %v1383_v34  ;;  %v1388_v42 = vpack.c.bf16 %v1384_v35, %v1384_v35  ;;  %v1444_v43 = vpop.permute.xlu1 %1443 }
 0x212   : > { %v1445_v29 = vsel %vm858_vm9, %v1442_v38, %v1444_v43  ;;  %v1446_v33 = vsel %vm858_vm9, %v1444_v43, %v1442_v38 }
 0x213   : > { %v1447_v44 = vmul.f32 %v1445_v29, %v2074_v45  ;;  %v1448_v15 = vmul.f32 %v1446_v33, %v2077_v46  ;;  %1646 = vmatmul.mubr.msk.bf16.vlgmr.msra.gmra.mxu0 %vm306_vm5, %v1644_v37  ;;  %1651 = vmatprep.subr.msk.bf16.mxu0 %vm310_vm3, %v1388_v42  ;;  %v1393_v16 = vsel %vm310_vm3, %v1387_v41, 0  ;;  %v1650_v46 = vld [vmem:[%s2309_s4 + $0x1c] sm:$0xf] }
 0x214   : > { %1413 = vmatpush1.bf16.msra.mxu0 %v1393_v16  ;;  %1430 = vmatprep.mubr.bf16.mxu0 %v1774_v1 }
 0x215   : > { %v1451_v48 = vpack.c.bf16 %v1447_v44, %v1447_v44  ;;  %v1452_v6 = vpack.c.bf16 %v1448_v15, %v1448_v15 }
 0x216   : > { %v1508_v34 = vpop.permute.xlu0 %1507 }
 0x217   : > { %1649 = vmatmul.mubr.msk.bf16.vlgmr.msra.gmra.mxu1 %vm306_vm5, %v1647_v47  ;;  %1654 = vmatprep.subr.msk.bf16.mxu1 %vm310_vm3, %v1452_v6  ;;  %v1457_v45 = vsel %vm310_vm3, %v1451_v48, 0 }
 0x218   : > { %1477 = vmatpush1.bf16.msra.mxu1 %v1457_v45  ;;  %1494 = vmatprep.mubr.bf16.mxu1 %v1774_v1 }
 0x21b   : > { %1652 = vmatmul.mubr.msk.bf16.vlgmr.msra.gmra.mxu0 %vm306_vm5, %v1650_v46 }
 0x21f   : > { %1655 = vmatmul.mubr.msk.bf16.vlgmr.msra.gmra.mxu1 %vm306_vm5, %v1653_v49 }
 0x2bf   : > { %v1008_v50 = vpop.f32.mrf.mxu1 }
 0x2c1   : > { %v1010_v14 = vpop.f32.mrf.mxu1 }
 0x2c3   : > { %v1012_v51 = vpop.f32.mrf.mxu1  ;;  %v1058_v17 = vpop.f32.mrf.mxu0 }
 0x2c4   : > { %v1059_v63 = vadd.f32 %v1058_v17, %v1008_v50 }
 0x2c5   : > { %v1013_v52 = vpop.f32.mrf.mxu1  ;;  %v1060_v53 = vpop.f32.mrf.mxu0 }
 0x2c6   : > { %v1061_v3 = vadd.f32 %v1060_v53, %v1010_v14 }
 0x2c7   : > { %v1062_v7 = vpop.f32.mrf.mxu0  ;;  %v1120_v8 = vpop.f32.mrf.mxu1 }
 0x2c8   : > { %v1127_v40 = vadd.f32 %v1120_v8, %v1059_v63 }
 0x2c9   : > { %v1063_v55 = vpop.f32.mrf.mxu0  ;;  %v1122_v56 = vpop.f32.mrf.mxu1 }
 0x2ca   : > { %v1128_v10 = vadd.f32 %v1122_v56, %v1061_v3 }
 0x2cb   : > { %v1124_v20 = vpop.f32.mrf.mxu1  ;;  %v1184_v1 = vpop.f32.mrf.mxu0 }
 0x2cc   : > { %v1191_v11 = vadd.f32 %v1184_v1, %v1127_v40 }
 0x2cd   : > { %v1125_v21 = vpop.f32.mrf.mxu1  ;;  %v1186_v57 = vpop.f32.mrf.mxu0 }
 0x2ce   : > { %v1192_v18 = vadd.f32 %v1186_v57, %v1128_v10 }
 0x2cf   : > { %v1188_v58 = vpop.f32.mrf.mxu0  ;;  %v1240_v60 = vpop.f32.mrf.mxu1 }
 0x2d0   : > { %v1247_v19 = vadd.f32 %v1240_v60, %v1191_v11 }
 0x2d1   : > { %v1189_v61 = vpop.f32.mrf.mxu0  ;;  %v1242_v62 = vpop.f32.mrf.mxu1 }
 0x2d2   : > { %v1248_v54 = vadd.f32 %v1242_v62, %v1192_v18 }
 0x2d3   : > { %v1244_v2 = vpop.f32.mrf.mxu1  ;;  %v1304_v39 = vpop.f32.mrf.mxu0 }
 0x2d4   : > { %v1311_v59 = vadd.f32 %v1304_v39, %v1247_v19 }
 0x2d5   : > { %v1245_v4 = vpop.f32.mrf.mxu1  ;;  %v1306_v5 = vpop.f32.mrf.mxu0 }
 0x2d6   : > { %v1312_v26 = vadd.f32 %v1306_v5, %v1248_v54 }
 0x2d7   : > { %v1308_v0 = vpop.f32.mrf.mxu0  ;;  %v1368_v13 = vpop.f32.mrf.mxu1 }
 0x2d8   : > { %v1375_v27 = vadd.f32 %v1368_v13, %v1311_v59 }
 0x2d9   : > { %v1309_v22 = vpop.f32.mrf.mxu0  ;;  %v1370_v23 = vpop.f32.mrf.mxu1 }
 0x2da   : > { %v1376_v31 = vadd.f32 %v1370_v23, %v1312_v26 }
 0x2db   : > { %v1372_v24 = vpop.f32.mrf.mxu1  ;;  %v1432_v25 = vpop.f32.mrf.mxu0 }
 0x2dc   : > { %v1439_v32 = vadd.f32 %v1432_v25, %v1375_v27 }
 0x2dd   : > { %v1373_v28 = vpop.f32.mrf.mxu1  ;;  %v1434_v30 = vpop.f32.mrf.mxu0 }
 0x2de   : > { %v1440_v35 = vadd.f32 %v1434_v30, %v1376_v31 }
 0x2df   : > { %v1496_v9 = vpop.f32.mrf.mxu1  ;;  %v1436_v12 = vpop.f32.mrf.mxu0 }
 0x2e0   : > { %v1503_v36 = vadd.f32 %v1496_v9, %v1439_v32 }
 0x2e1   : > { %v1498_v37 = vpop.f32.mrf.mxu1  ;;  %v1437_v38 = vpop.f32.mrf.mxu0 }
 0x2e2   : > { %v1510_v41 = vadd.f32 %v1508_v34, %v1503_v36  ;;  %v1504_v42 = vadd.f32 %v1498_v37, %v1440_v35 }
 0x2e3   : > { %v1500_v43 = vpop.f32.mrf.mxu1 }
 0x2e4   : > { %v1512_v29 = vmax.f32 %v1510_v41, 0.0  ;;  %v1511_v33 = vadd.f32 %v1508_v34, %v1504_v42 }
 0x2e5   : > { %v1501_v44 = vpop.f32.mrf.mxu1 }
 0x2e6   : > { %1514 = vst [vmem:[%s244_s29] sm:$0xff] %v1512_v29  ;;  %v1513_v15 = vmax.f32 %v1511_v33, 0.0 }
 0x2e8   : > { %1515 = vst [vmem:[%s244_s29 + $0x8] sm:$0xff] %v1513_v15 }
 0x2e9   : > { %1725 = shalt.err (!%p1722_p3)
}
 0x2ea   : > { %s1726_s16 = scalar_lea.hbm %s1529_s12, 256  ;;  %s1730_s19 = scalar_lea.hbm %s2311_s6, 512 }
 0x2eb   : > { %p1727_p4 = scmp.ne.s32.totalorder %s1529_s12, %s1726_s16  ;;  %p1731_p9 = scmp.lt.s32.totalorder %s1529_s12, %s2311_s6 }
 0x2ec   : > { %p1732_p10 = scmp.lt.s32.totalorder %s1730_s19, %s1726_s16 }
 0x2ed   : > { %p1728_p7 = pnand %p1727_p4, %p1857_p5 }
 0x2ee   : > { %p1733_p11 = por %p1732_p10, %p1731_p9 }
 0x2ef   : > { %p1729_p8 = pneg %p1728_p7 }
 0x2f1   : > { %p1734_p12 = pnand %p1733_p11, %p1729_p8 }
 0x2f3   : > { %1737 = shalt.err (!%p1734_p12)
}
 0x2f4   : > { %1663 = dma.vmem_to_hbm [thread:$0]  (%p1857_p5), %s1532_s9, 256, %s1529_s12, %s1517_s13  }
 0x2f5 PF: > { %p1669_p13 = scmp.ge.s32.totalorder %s1772_s24, 2  ;;  %s1543_s29 = sand.u32 1, %s1760_s21  }
 0x2f6   : > { %s1544_s10 = scalar_lea.sflag [#allocation3], %s1543_s29 }
 0x2f7   : > { %p1666_p0 = pnand %p1669_p13, %p1861_p6 }
 0x2f9   : > { %p1667_p1 = pneg %p1666_p0 }
 0x2fb   : > { %1755 = dma.done.wait (%p1667_p1), %s1544_s10, 256  }
 0x2fc   : > { %1757 = vsyncadd (%p1667_p1), %s1544_s10, 4294967040  ;;  %p16_p2 = scmp.ge.s32.totalorder %s1844_s27, 4   ;;  %s2314_s21 = smov %s1764_s22 }
 0x2fd   : > { %s2315_s22 = smov %s1768_s23  ;;  %s2316_s23 = smov %s1855_s30 }
 0x2fe   : > { %s2317_s24 = smov %s1844_s27  ;;  %18 = sbr.rel (!%p16_p2) target bundleno = 3 (0x3), region = 102 }
 0x303   :  { %1549 = vsyncpa [#allocation3], 1 }
 0x304   :  { %1551 = vsyncpa [#allocation3 + $0x1], 1 }

</bundles_post_ra>
